<compile_context>
chip_gen: v6e
topology: v6e:2x2x1
jax: 0.10.0
libtpu: 0.0.40
codegen_flags: <defaults>
</compile_context>

<pallas_src>
import jax
import jax.numpy as jnp
from jax import lax
from jax.experimental import pallas as pl
from jax.experimental.pallas import tpu as pltpu

LANE = 128          # lane width: all feature dims padded to a multiple of this


def round_up(x, m):
    return (x + m - 1) // m * m


def pad2(x, rows, cols):
    return jnp.pad(x, ((0, rows - x.shape[0]), (0, cols - x.shape[1])))


def _vmem_budget_bytes():
    """~3/4 of this generation's VMEM (48 MiB on v7x, 96 MiB on v5e/v6e)."""
    try:
        cap = int(pltpu.get_tpu_info().vmem_capacity_bytes)
    except Exception:
        cap = 64 * 1024 * 1024          # conservative fallback (v7x-sized)
    return (cap * 3) // 4


def _pick_tiles(n):
    """Choose (n_pad, TM, TK) for the node dimension.

    - TM as large as possible while keeping >=2 row tiles (feeds both v7x TCs).
    - TK large (<=1024, aligned); n is padded UP to a multiple of TM/TK rather
      than shrinking TK.
    """
    n_pad0 = round_up(n, LANE)
    if n_pad0 >= 1024:
        tm = 512
    elif n_pad0 >= 512:
        tm = 256
    else:
        tm = 128
    if n_pad0 <= 1024:
        n_pad = round_up(n_pad0, tm)
        tk = n_pad                      # single contraction step
    else:
        n_pad = round_up(n_pad0, tm)    # tm == 512 here, so n_pad % 512 == 0
        tk = 1024 if n_pad % 1024 == 0 else 512
    return n_pad, tm, tk


# ----------------------------- Pallas kernels ------------------------------ #

def xw_kernel(x_ref, w_ref, h_ref):
    # H_tile = X_tile @ W   (fp32 accumulation, stored in compute dtype)
    h_ref[...] = jnp.dot(
        x_ref[...], w_ref[...], preferred_element_type=jnp.float32
    ).astype(h_ref.dtype)


def _bias_prelu(acc, b, alpha):
    z = acc + b
    return jnp.where(z >= 0.0, z, alpha * z)


def agg_prelu_kernel_stream(a_ref, h_ref, b_ref, alpha_ref, out_ref, acc_ref):
    # acc += A_hat_tile(i,k) @ H_tile(k);  epilogue: bias + PReLU on last k.
    k = pl.program_id(1)

    @pl.when(k == 0)
    def _():
        acc_ref[...] = jnp.zeros_like(acc_ref)

    acc_ref[...] += jnp.dot(
        a_ref[...], h_ref[...], preferred_element_type=jnp.float32)

    @pl.when(k == pl.num_programs(1) - 1)
    def _():
        out_ref[...] = _bias_prelu(
            acc_ref[...], b_ref[...], alpha_ref[...]).astype(out_ref.dtype)


def make_agg_prelu_kernel_resident(tk):
    """Variant where the full H lives in VMEM; slice the K chunk in-kernel."""
    def kernel(a_ref, h_ref, b_ref, alpha_ref, out_ref, acc_ref):
        k = pl.program_id(1)

        @pl.when(k == 0)
        def _():
            acc_ref[...] = jnp.zeros_like(acc_ref)

        off = pl.multiple_of(k * tk, tk)
        acc_ref[...] += jnp.dot(
            a_ref[...], h_ref[pl.ds(off, tk), :],
            preferred_element_type=jnp.float32)

        @pl.when(k == pl.num_programs(1) - 1)
        def _():
            out_ref[...] = _bias_prelu(
                acc_ref[...], b_ref[...], alpha_ref[...]).astype(out_ref.dtype)
    return kernel


# ------------------------------ layer driver -------------------------------- #

def gcn_layer(a_hat, x, w, b, alpha, *, tm, tk, out_dtype, vmem_budget):
    """One GCN layer: PReLU(A_hat @ (x @ w) + b).  All inputs pre-padded/cast."""
    n_pad, f_pad = x.shape
    h_pad = w.shape[1]
    compute_dtype = x.dtype
    itemsize = jnp.dtype(compute_dtype).itemsize
    out_itemsize = jnp.dtype(out_dtype).itemsize
    assert n_pad % tm == 0 and n_pad % tk == 0
    assert f_pad % LANE == 0 and h_pad % LANE == 0

    # ---- H = X @ W  (row-tiled; H emitted in compute dtype) ----
    h = pl.pallas_call(
        xw_kernel,
        out_shape=jax.ShapeDtypeStruct((n_pad, h_pad), compute_dtype),
        grid=(n_pad // tm,),
        in_specs=[
            pl.BlockSpec((tm, f_pad), lambda i: (i, 0)),
            pl.BlockSpec((f_pad, h_pad), lambda i: (0, 0)),
        ],
        out_specs=pl.BlockSpec((tm, h_pad), lambda i: (i, 0)),
        compiler_params=pltpu.CompilerParams(
            dimension_semantics=("parallel",),
            vmem_limit_bytes=vmem_budget),
        cost_estimate=pl.CostEstimate(
            flops=2 * n_pad * f_pad * h_pad,
            transcendentals=0,
            bytes_accessed=(n_pad * f_pad + f_pad * h_pad
                            + n_pad * h_pad) * itemsize),
    )(x, w)

    # ---- Z = PReLU(A_hat @ H + b)  (row-tiled, K-tiled accumulation) ----
    # Make H VMEM-resident when it fits: DMA'd from HBM exactly once instead of
    # once per row tile.  Footprint budgeted with 2x buffering on every block
    # (no pl.Buffered(1) used, so be conservative).
    resident_bytes = (2 * n_pad * h_pad * itemsize       # resident H
                      + 2 * tm * tk * itemsize           # A_hat tiles
                      + 2 * tm * h_pad * out_itemsize    # output tiles
                      + tm * h_pad * 4                   # f32 accumulator
                      + 4 * h_pad * 4)                   # bias + alpha
    resident_h = resident_bytes <= vmem_budget

    if resident_h:
        agg_kernel = make_agg_prelu_kernel_resident(tk)
        h_spec = pl.BlockSpec((n_pad, h_pad), lambda i, k: (0, 0))
        h_bytes = n_pad * h_pad * itemsize                       # fetched once
    else:
        agg_kernel = agg_prelu_kernel_stream
        h_spec = pl.BlockSpec((tk, h_pad), lambda i, k: (k, 0))
        h_bytes = (n_pad // tm) * n_pad * h_pad * itemsize       # re-streamed

    z = pl.pallas_call(
        agg_kernel,
        out_shape=jax.ShapeDtypeStruct((n_pad, h_pad), out_dtype),
        grid=(n_pad // tm, n_pad // tk),
        in_specs=[
            pl.BlockSpec((tm, tk), lambda i, k: (i, k)),
            h_spec,
            pl.BlockSpec((1, h_pad), lambda i, k: (0, 0)),
            pl.BlockSpec((1, h_pad), lambda i, k: (0, 0)),
        ],
        out_specs=pl.BlockSpec((tm, h_pad), lambda i, k: (i, 0)),
        scratch_shapes=[pltpu.VMEM((tm, h_pad), jnp.float32)],
        compiler_params=pltpu.CompilerParams(
            dimension_semantics=("parallel", "arbitrary"),
            vmem_limit_bytes=vmem_budget),
        cost_estimate=pl.CostEstimate(
            flops=2 * n_pad * n_pad * h_pad,
            transcendentals=0,
            bytes_accessed=(n_pad * n_pad * itemsize        # A_hat
                            + h_bytes                        # H traffic
                            + n_pad * h_pad * out_itemsize   # output
                            + 2 * h_pad * 4)),               # bias + alpha
    )(a_hat, h, b, alpha)
    return z


# ------------------------------- JAX glue ---------------------------------- #

def gcn_norm_dense(edge_index, edge_weight, num_nodes):
    """Dense D^{-1/2}(A + I)D^{-1/2} matching PyG gcn_norm (fill_value=1)."""
    src, dst = edge_index[0], edge_index[1]
    if edge_weight is None:
        edge_weight = jnp.ones(src.shape[0], jnp.float32)
    adj = jnp.zeros((num_nodes, num_nodes), jnp.float32)
    adj = adj.at[dst, src].add(edge_weight)             # A[dst, src] += w
    adj = adj + jnp.eye(num_nodes, dtype=jnp.float32)   # self loops, weight 1
    deg = adj.sum(axis=1)                               # degree incl. self loop
    dinv = jnp.where(deg > 0, lax.rsqrt(deg), 0.0)
    return dinv[:, None] * adj * dinv[None, :]


def init_gconv_params(key, input_dim, hidden_dim, num_layers):
    params = []
    for i in range(num_layers):
        in_dim = input_dim if i == 0 else hidden_dim
        key, wk = jax.random.split(key)
        limit = jnp.sqrt(6.0 / (in_dim + hidden_dim))           # glorot uniform
        w = jax.random.uniform(wk, (in_dim, hidden_dim), jnp.float32,
                               -limit, limit)
        b = jnp.zeros((1, hidden_dim), jnp.float32)             # GCNConv bias=0
        params.append((w, b))
    alpha = jnp.full((1, hidden_dim), 0.25, jnp.float32)        # PReLU init
    return params, alpha


def gconv_forward(x, edge_index, params, alpha, edge_weight=None,
                  compute_dtype=jnp.bfloat16):
    n, f = x.shape
    hidden_dim = params[0][0].shape[1]
    num_layers = len(params)

    n_pad, tm, tk = _pick_tiles(n)
    h_pad = round_up(hidden_dim, LANE)
    vmem_budget = _vmem_budget_bytes()

    # A_hat padded + cast exactly ONCE (hoisted out of the layer loop).
    a_hat = gcn_norm_dense(edge_index, edge_weight, n)
    a_p = pad2(a_hat, n_pad, n_pad).astype(compute_dtype)
    alpha_p = pad2(alpha, 1, h_pad)                          # kept in fp32

    z = pad2(x, n_pad, round_up(f, LANE)).astype(compute_dtype)
    for li, (w, b) in enumerate(params):
        in_dim = w.shape[0]
        w_p = pad2(w, round_up(in_dim, LANE), h_pad).astype(compute_dtype)
        b_p = pad2(b, 1, h_pad)                              # kept in fp32
        # Intermediate layers stay in compute_dtype end-to-end; only the final
        # layer writes fp32.
        out_dtype = jnp.float32 if li == num_layers - 1 else compute_dtype
        z = gcn_layer(a_p, z, w_p, b_p, alpha_p, tm=tm, tk=tk,
                      out_dtype=out_dtype, vmem_budget=vmem_budget)

    return z[:n, :hidden_dim]


# --------------------------- reference (pure JAX) --------------------------- #

def gconv_reference(x, edge_index, params, alpha, edge_weight=None):
    n = x.shape[0]
    a_hat = gcn_norm_dense(edge_index, edge_weight, n)
    z = x
    for (w, b) in params:
        z = a_hat @ (z @ w) + b
        z = jnp.where(z >= 0.0, z, alpha * z)
    return z


# ----------------------------------- main ----------------------------------- #

if __name__ == "__main__":
    num_nodes = 16
    input_dim = 32
    hidden_dim = 32
    num_layers = 2

    key = jax.random.PRNGKey(0)
    key, xk = jax.random.split(key)
    x = jax.random.normal(xk, (num_nodes, input_dim), jnp.float32)

    # Deterministic small graph: bidirectional ring + a couple of chords.
    src = list(range(num_nodes)) + [(i + 1) % num_nodes for i in range(num_nodes)]
    dst = [(i + 1) % num_nodes for i in range(num_nodes)] + list(range(num_nodes))
    src += [0, 5, 3, 11]
    dst += [5, 0, 11, 3]
    edge_index = jnp.array([src, dst], dtype=jnp.int32)

    params, alpha = init_gconv_params(key, input_dim, hidden_dim, num_layers)

    ref = gconv_reference(x, edge_index, params, alpha)

    # Exact-precision path: fp32 MXU inputs, tight check against reference.
    out_f32 = gconv_forward(x, edge_index, params, alpha,
                            compute_dtype=jnp.float32)
    out_f32 = jax.block_until_ready(out_f32)
    assert out_f32.shape == (num_nodes, hidden_dim)
    assert jnp.allclose(out_f32, ref, atol=1e-4, rtol=1e-4)

    # Default/performance path: bf16 MXU inputs with fp32 accumulation.
    out_bf16 = gconv_forward(x, edge_index, params, alpha)
    out_bf16 = jax.block_until_ready(out_bf16)
    assert out_bf16.shape == (num_nodes, hidden_dim)
    assert jnp.allclose(out_bf16, ref, atol=1e-1, rtol=1e-1)

    print("KERNEL_OK")
</pallas_src>

<mosaic_0001>
module attributes {stable_mosaic.version = 11 : i64} {
  func.func @xw_kernel(%arg0: i32, %arg1: memref<128x128xf32, #tpu.memory_space<vmem>>, %arg2: memref<128x128xf32, #tpu.memory_space<vmem>>, %arg3: memref<128x128xf32, #tpu.memory_space<vmem>>) attributes {dimension_semantics = [#tpu.dimension_semantics<parallel>], iteration_bounds = array<i64: 1>, scalar_prefetch = 0 : i64, scratch_operands = 0 : i64, tpu.core_type = #tpu.core_type<tc>, window_params = [{transform_indices = @transform_0, window_bounds = array<i64: 128, 128>}, {pipeline_mode = #tpu.pipeline_mode<synchronous>, transform_indices = @transform_1, window_bounds = array<i64: 128, 128>}, {transform_indices = @transform_2, window_bounds = array<i64: 128, 128>}]} {
    %c0 = arith.constant 0 : index
    %c0_0 = arith.constant 0 : index
    %0 = vector.load %arg1[%c0, %c0_0] : memref<128x128xf32, #tpu.memory_space<vmem>>, vector<128x128xf32>
    %c0_1 = arith.constant 0 : index
    %c0_2 = arith.constant 0 : index
    %1 = vector.load %arg2[%c0_1, %c0_2] : memref<128x128xf32, #tpu.memory_space<vmem>>, vector<128x128xf32>
    %cst = arith.constant dense<0.000000e+00> : vector<128x128xf32>
    %2 = tpu.matmul %0, %1, %cst {dimension_numbers = #tpu.dot_dimension_numbers<[1], [0], [0], [1], [0, 0, 1, 1], [], []>} : vector<128x128xf32>, vector<128x128xf32>, vector<128x128xf32> -> vector<128x128xf32>
    %c0_3 = arith.constant 0 : index
    %c0_4 = arith.constant 0 : index
    %3 = vector.load %arg3[%c0_3, %c0_4] : memref<128x128xf32, #tpu.memory_space<vmem>>, vector<128x128xf32>
    tpu.vector_store %arg3[%c0_3, %c0_4], %2 {strides = array<i32>} : memref<128x128xf32, #tpu.memory_space<vmem>>, vector<128x128xf32>,
    return
  }
  func.func @transform_0(%arg0: i32) -> (i32, i32) {
    %c0_i32 = arith.constant 0 : i32
    %c0_i32_0 = arith.constant 0 : i32
    return %arg0, %c0_i32 : i32, i32
  }
  func.func @transform_1(%arg0: i32) -> (i32, i32) {
    %c0_i32 = arith.constant 0 : i32
    %c0_i32_0 = arith.constant 0 : i32
    %c0_i32_1 = arith.constant 0 : i32
    return %c0_i32, %c0_i32_0 : i32, i32
  }
  func.func @transform_2(%arg0: i32) -> (i32, i32) {
    %c0_i32 = arith.constant 0 : i32
    %c0_i32_0 = arith.constant 0 : i32
    return %arg0, %c0_i32 : i32, i32
  }
}

</mosaic_0001>

<bundles_post_ra>
// kernel: tpu_custom_call.1
= control target key start
LH: loop header
LB: loop body
LE: loop exit
PB: predicated region body
PF: predicated region fallthrough
CT: control target
= control target key end

     0   :  { %7 = vsyncpa [#allocation3], 0  ;;  %s480_s0 = inlined_call_operand.hbm [shape: f32[128,128], index: 0, kind: input, shape index: {}]   ;;  %s481_s1 = inlined_call_operand.hbm [shape: f32[128,128], index: 1, kind: input, shape index: {}]   ;;  %s482_s2 = inlined_call_operand.hbm [shape: f32[128,128], index: 2, kind: output, shape index: {}]  }
   0x1   :  { %8 = vsyncpa [#allocation6], 0 }
   0x2   :  { %9 = vsyncpa [#allocation4], 0  ;;  %s442_s9 = smov [#allocation2]  }
   0x3   :  { %s15_s10 = sshll.u32 %s442_s9, 4  ;;  %s16_s10 = int_to_ptr.vmem [resolvable:$true] %s15_s10 }
   0x4   :  { %s384_s11 = scalar_lea.vmem %s16_s10, 2048  ;;  %p389_p1 = scmp.lt.s32.totalorder %s16_s10, %s16_s10 }
   0x5   :  { %p385_p0 = scmp.ne.s32.totalorder %s16_s10, %s384_s11  ;;  %p390_p2 = scmp.lt.s32.totalorder %s384_s11, %s384_s11 }
   0x7   :  { %p391_p3 = por %p390_p2, %p389_p1 }
   0x9   :  { %p392_p4 = pnand %p391_p3, %p385_p0 }
   0xb   :  { %395 = shalt.err (!%p392_p4)
}
   0xc   :  { %s443_s12 = smov 128   ;;  %s444_s13 = smov 8  }
   0xd   :  { %21 = dma.hbm_to_vmem [thread:$0]  %s480_s0, 2048, %s16_s10, [#allocation3], %s443_s12, %s443_s12, %s444_s13  }
   0xe   :  { %s445_s16 = smov [#allocation5]  }
   0xf   :  { %s27_s17 = sshll.u32 %s445_s16, 4  ;;  %s28_s17 = int_to_ptr.vmem [resolvable:$true] %s27_s17 }
  0x10   :  { %s404_s18 = scalar_lea.vmem %s28_s17, 2048  ;;  %p409_p6 = scmp.lt.s32.totalorder %s28_s17, %s28_s17 }
  0x11   :  { %p405_p5 = scmp.ne.s32.totalorder %s28_s17, %s404_s18  ;;  %p410_p7 = scmp.lt.s32.totalorder %s404_s18, %s404_s18 }
  0x13   :  { %p411_p8 = por %p410_p7, %p409_p6 }
  0x15   :  { %p412_p9 = pnand %p411_p8, %p405_p5 }
  0x17   :  { %415 = shalt.err (!%p412_p9)
}
  0x18   :  { %33 = dma.hbm_to_vmem [thread:$0]  %s481_s1, 2048, %s28_s17, [#allocation6], %s443_s12, %s443_s12, %s444_s13  }
  0x19   :  { %436 = dma.done.wait [#allocation3], 2048  }
  0x1a   :  { %437 = vsyncadd [#allocation3], 4294965248 }
  0x1b   :  { %438 = dma.done.wait [#allocation6], 2048  }
  0x1c   :  { %439 = vsyncadd [#allocation6], 4294965248  ;;  %v71_v0 = vld [vmem:[#allocation5 + $0x78] sm:$0xff]  ;;  %v70_v1 = vld [vmem:[#allocation5 + $0x70] sm:$0xff]  ;;  %s446_s0 = smov [#allocation7]  }
  0x1d   :  { %283 = vmatprep.subr.mxu0 %v71_v0  ;;  %339 = vmatprep.subr.mxu1 %v71_v0  ;;  %v69_v2 = vld [vmem:[#allocation5 + $0x68] sm:$0xff]  ;;  %v68_v3 = vld [vmem:[#allocation5 + $0x60] sm:$0xff]  ;;  %v67_v4 = vld [vmem:[#allocation5 + $0x58] sm:$0xff]  ;;  %s238_s1 = sshll.u32 %s446_s0, 4  ;;  %s239_s1 = int_to_ptr.vmem [resolvable:$true] %s238_s1 }
  0x1e   :  { %284 = vmatpush3.msra.mxu0 %v71_v0  ;;  %355 = vmatpush3.msra.mxu1 %v71_v0  ;;  %v66_v5 = vld [vmem:[#allocation5 + $0x50] sm:$0xff]  ;;  %v65_v6 = vld [vmem:[#allocation5 + $0x48] sm:$0xff]  ;;  %v64_v7 = vld [vmem:[#allocation5 + $0x40] sm:$0xff]  ;;  %s416_s21 = scalar_lea.vmem %s239_s1, 2048  ;;  %p421_p11 = scmp.lt.s32.totalorder %s239_s1, %s239_s1 }
  0x1f   :  { %285 = vmatprep.subr.mxu0 %v70_v1  ;;  %340 = vmatprep.subr.mxu1 %v70_v1  ;;  %v63_v8 = vld [vmem:[#allocation5 + $0x38] sm:$0xff]  ;;  %v62_v9 = vld [vmem:[#allocation5 + $0x30] sm:$0xff]  ;;  %v61_v10 = vld [vmem:[#allocation5 + $0x28] sm:$0xff]  ;;  %p417_p10 = scmp.ne.s32.totalorder %s239_s1, %s416_s21  ;;  %p422_p12 = scmp.lt.s32.totalorder %s416_s21, %s416_s21 }
  0x20   :  { %286 = vmatpush3.msra.mxu0 %v70_v1  ;;  %356 = vmatpush3.msra.mxu1 %v70_v1  ;;  %v60_v11 = vld [vmem:[#allocation5 + $0x20] sm:$0xff]  ;;  %v59_v12 = vld [vmem:[#allocation5 + $0x18] sm:$0xff]  ;;  %v58_v13 = vld [vmem:[#allocation5 + $0x10] sm:$0xff] }
  0x21   :  { %287 = vmatprep.subr.mxu0 %v69_v2  ;;  %341 = vmatprep.subr.mxu1 %v69_v2  ;;  %v57_v14 = vld [vmem:[#allocation5 + $0x8] sm:$0xff]  ;;  %v56_v15 = vld [vmem:[#allocation5] sm:$0xff]  ;;  %v42_v20 = vld [vmem:[#allocation2 + $0x10] sm:$0xff]  ;;  %p423_p13 = por %p422_p12, %p421_p11 }
  0x22   :  { %288 = vmatpush3.msra.mxu0 %v69_v2  ;;  %357 = vmatpush3.msra.mxu1 %v69_v2  ;;  %v40_v16 = vld [vmem:[#allocation2] sm:$0xff]  ;;  %v41_v18 = vld [vmem:[#allocation2 + $0x8] sm:$0xff]  ;;  %v50_v21 = vld [vmem:[#allocation2 + $0x50] sm:$0xff] }
  0x23   :  { %289 = vmatprep.subr.mxu0 %v68_v3  ;;  %342 = vmatprep.subr.mxu1 %v68_v3  ;;  %v48_v17 = vld [vmem:[#allocation2 + $0x40] sm:$0xff]  ;;  %v49_v19 = vld [vmem:[#allocation2 + $0x48] sm:$0xff]  ;;  %v43_v22 = vld [vmem:[#allocation2 + $0x18] sm:$0xff]  ;;  %p424_p0 = pnand %p423_p13, %p417_p10 }
  0x24   :  { %290 = vmatpush3.msra.mxu0 %v68_v3  ;;  %358 = vmatpush3.msra.mxu1 %v68_v3  ;;  %v51_v23 = vld [vmem:[#allocation2 + $0x58] sm:$0xff]  ;;  %v44_v24 = vld [vmem:[#allocation2 + $0x20] sm:$0xff]  ;;  %v45_v26 = vld [vmem:[#allocation2 + $0x28] sm:$0xff] }
  0x25   :  { %291 = vmatprep.subr.mxu0 %v67_v4  ;;  %343 = vmatprep.subr.mxu1 %v67_v4  ;;  %v52_v25 = vld [vmem:[#allocation2 + $0x60] sm:$0xff]  ;;  %v53_v27 = vld [vmem:[#allocation2 + $0x68] sm:$0xff]  ;;  %v46_v28 = vld [vmem:[#allocation2 + $0x30] sm:$0xff] }
  0x26   :  { %292 = vmatpush3.msra.mxu0 %v67_v4  ;;  %359 = vmatpush3.msra.mxu1 %v67_v4  ;;  %v54_v29 = vld [vmem:[#allocation2 + $0x70] sm:$0xff]  ;;  %v47_v30 = vld [vmem:[#allocation2 + $0x38] sm:$0xff] }
  0x27   :  { %293 = vmatprep.subr.mxu0 %v66_v5  ;;  %344 = vmatprep.subr.mxu1 %v66_v5  ;;  %v55_v31 = vld [vmem:[#allocation2 + $0x78] sm:$0xff] }
  0x28   :  { %294 = vmatpush3.msra.mxu0 %v66_v5  ;;  %360 = vmatpush3.msra.mxu1 %v66_v5 }
  0x29   :  { %295 = vmatprep.subr.mxu0 %v65_v6  ;;  %345 = vmatprep.subr.mxu1 %v65_v6 }
  0x2a   :  { %296 = vmatpush3.msra.mxu0 %v65_v6  ;;  %361 = vmatpush3.msra.mxu1 %v65_v6 }
  0x2b   :  { %297 = vmatprep.subr.mxu0 %v64_v7  ;;  %346 = vmatprep.subr.mxu1 %v64_v7 }
  0x2c   :  { %298 = vmatpush3.msra.mxu0 %v64_v7  ;;  %362 = vmatpush3.msra.mxu1 %v64_v7 }
  0x2d   :  { %299 = vmatprep.subr.mxu0 %v63_v8  ;;  %347 = vmatprep.subr.mxu1 %v63_v8 }
  0x2e   :  { %300 = vmatpush3.msra.mxu0 %v63_v8  ;;  %363 = vmatpush3.msra.mxu1 %v63_v8 }
  0x2f   :  { %301 = vmatprep.subr.mxu0 %v62_v9  ;;  %348 = vmatprep.subr.mxu1 %v62_v9 }
  0x30   :  { %302 = vmatpush3.msra.mxu0 %v62_v9  ;;  %364 = vmatpush3.msra.mxu1 %v62_v9 }
  0x31   :  { %303 = vmatprep.subr.mxu0 %v61_v10  ;;  %349 = vmatprep.subr.mxu1 %v61_v10 }
  0x32   :  { %304 = vmatpush3.msra.mxu0 %v61_v10  ;;  %365 = vmatpush3.msra.mxu1 %v61_v10 }
  0x33   :  { %305 = vmatprep.subr.mxu0 %v60_v11  ;;  %350 = vmatprep.subr.mxu1 %v60_v11 }
  0x34   :  { %306 = vmatpush3.msra.mxu0 %v60_v11  ;;  %366 = vmatpush3.msra.mxu1 %v60_v11 }
  0x35   :  { %307 = vmatprep.subr.mxu0 %v59_v12  ;;  %351 = vmatprep.subr.mxu1 %v59_v12 }
  0x36   :  { %308 = vmatpush3.msra.mxu0 %v59_v12  ;;  %367 = vmatpush3.msra.mxu1 %v59_v12 }
  0x37   :  { %309 = vmatprep.subr.mxu0 %v58_v13  ;;  %352 = vmatprep.subr.mxu1 %v58_v13 }
  0x38   :  { %310 = vmatpush3.msra.mxu0 %v58_v13  ;;  %368 = vmatpush3.msra.mxu1 %v58_v13 }
  0x39   :  { %311 = vmatprep.subr.mxu0 %v57_v14  ;;  %353 = vmatprep.subr.mxu1 %v57_v14 }
  0x3a   :  { %312 = vmatpush3.msra.mxu0 %v57_v14  ;;  %369 = vmatpush3.msra.mxu1 %v57_v14 }
  0x3b   :  { %313 = vmatprep.subr.mxu0 %v56_v15  ;;  %354 = vmatprep.subr.mxu1 %v56_v15 }
  0x3c   :  { %314 = vmatpush3.msra.mxu0 %v56_v15  ;;  %370 = vmatpush3.msra.mxu1 %v56_v15 }
  0x3d   :  { %315 = vmatprep.mubr.f32.mxu0 %v40_v16  ;;  %327 = vmatprep.mubr.f32.mxu1 %v48_v17 }
  0x3e   :  { %316 = vmatmul.mubr.f32.vlgmr.msra.gmra.mxu0 %v41_v18  ;;  %328 = vmatmul.mubr.f32.vlgmr.msra.gmra.mxu1 %v49_v19 }
  0x3f   :  { %318 = vmatprep.mubr.f32.mxu0 %v42_v20  ;;  %330 = vmatprep.mubr.f32.mxu1 %v50_v21 }
  0x42   :  { %319 = vmatmul.mubr.f32.gmra.mxu0 %v43_v22  ;;  %331 = vmatmul.mubr.f32.gmra.mxu1 %v51_v23 }
  0x43   :  { %321 = vmatprep.mubr.f32.mxu0 %v44_v24  ;;  %333 = vmatprep.mubr.f32.mxu1 %v52_v25 }
  0x46   :  { %322 = vmatmul.mubr.f32.gmra.mxu0 %v45_v26  ;;  %334 = vmatmul.mubr.f32.gmra.mxu1 %v53_v27 }
  0x47   :  { %324 = vmatprep.mubr.f32.mxu0 %v46_v28  ;;  %336 = vmatprep.mubr.f32.mxu1 %v54_v29 }
  0x4a   :  { %325 = vmatmul.mubr.f32.gmra.mxu0 %v47_v30  ;;  %337 = vmatmul.mubr.f32.gmra.mxu1 %v55_v31 }
  0xfe   :  { %v317_v32 = vpop.f32.mrf.mxu0  ;;  %v329_v33 = vpop.f32.mrf.mxu1 }
  0xff   :  { %218 = vst [vmem:[#allocation7 + $0x8] sm:$0xff] %v317_v32  ;;  %226 = vst [vmem:[#allocation7 + $0x48] sm:$0xff] %v329_v33 }
 0x100   :  { %v138_v34 = vpop.f32.mrf.mxu0  ;;  %v178_v35 = vpop.f32.mrf.mxu1 }
 0x101   :  { %217 = vst [vmem:[#allocation7] sm:$0xff] %v138_v34  ;;  %225 = vst [vmem:[#allocation7 + $0x40] sm:$0xff] %v178_v35 }
 0x102   :  { %v320_v36 = vpop.f32.mrf.mxu0  ;;  %v332_v37 = vpop.f32.mrf.mxu1 }
 0x103   :  { %220 = vst [vmem:[#allocation7 + $0x18] sm:$0xff] %v320_v36  ;;  %228 = vst [vmem:[#allocation7 + $0x58] sm:$0xff] %v332_v37 }
 0x104   :  { %v148_v38 = vpop.f32.mrf.mxu0  ;;  %v188_v39 = vpop.f32.mrf.mxu1 }
 0x105   :  { %219 = vst [vmem:[#allocation7 + $0x10] sm:$0xff] %v148_v38  ;;  %227 = vst [vmem:[#allocation7 + $0x50] sm:$0xff] %v188_v39 }
 0x106   :  { %v323_v40 = vpop.f32.mrf.mxu0  ;;  %v335_v41 = vpop.f32.mrf.mxu1 }
 0x107   :  { %222 = vst [vmem:[#allocation7 + $0x28] sm:$0xff] %v323_v40  ;;  %230 = vst [vmem:[#allocation7 + $0x68] sm:$0xff] %v335_v41 }
 0x108   :  { %v158_v42 = vpop.f32.mrf.mxu0  ;;  %v198_v43 = vpop.f32.mrf.mxu1 }
 0x109   :  { %221 = vst [vmem:[#allocation7 + $0x20] sm:$0xff] %v158_v42  ;;  %229 = vst [vmem:[#allocation7 + $0x60] sm:$0xff] %v198_v43 }
 0x10a   :  { %v326_v44 = vpop.f32.mrf.mxu0  ;;  %v338_v45 = vpop.f32.mrf.mxu1 }
 0x10b   :  { %224 = vst [vmem:[#allocation7 + $0x38] sm:$0xff] %v326_v44  ;;  %232 = vst [vmem:[#allocation7 + $0x78] sm:$0xff] %v338_v45 }
 0x10c   :  { %v168_v46 = vpop.f32.mrf.mxu0  ;;  %v208_v47 = vpop.f32.mrf.mxu1 }
 0x10d   :  { %223 = vst [vmem:[#allocation7 + $0x30] sm:$0xff] %v168_v46  ;;  %231 = vst [vmem:[#allocation7 + $0x70] sm:$0xff] %v208_v47 }
 0x10e   :  { %427 = shalt.err (!%p424_p0)
}
 0x10f   :  { %244 = dma.vmem_to_hbm [thread:$0]  %s239_s1, 2048, %s482_s2, [#allocation4], %s443_s12, %s443_s12, %s444_s13  }
 0x110   :  { %440 = dma.done.wait [#allocation4], 2048  }
 0x111   :  { %441 = vsyncadd [#allocation4], 4294965248 }
 0x112   :  { %248 = vsyncpa [#allocation3], 1 }
 0x113   :  { %249 = vsyncpa [#allocation6], 1 }
 0x114   :  { %250 = vsyncpa [#allocation4], 1 }

</bundles_post_ra>
